<compile_context>
chip_gen: v7x
topology: tpu7x:2x2x1
jax: 0.10.0
libtpu: 0.0.40
codegen_flags: <defaults>
</compile_context>

<pallas_src>
import functools

import jax
import jax.numpy as jnp
from jax.experimental import pallas as pl
from jax.experimental.pallas import tpu as pltpu


def _double_conv_kernel(x_ref, mask_ref, w1_ref, b1_ref, w2_ref, b2_ref,
                        o_ref, hpad_ref, *, H, W):
    """One grid step = one batch element, fully fused DoubleConv.

    x_ref   : (1, Cin, Hp*Wp + 2)  zero-padded input, channel-major flat
    mask_ref: (1, H*Wp)            1.0 on valid output columns, 0.0 on the
                                   2 padding columns per row
    w1_ref  : (9, Cmid, Cin)       conv1 per-tap weights, BN1 scale folded in
    b1_ref  : (Cmid, 1)            folded BN1 bias
    w2_ref  : (9, Cout, Cmid)      conv2 per-tap weights, BN2 scale folded in
    b2_ref  : (Cout, 1)            folded BN2 bias
    o_ref   : (1, Cout, H*Wp)      output (garbage cols stripped in wrapper)
    hpad_ref: (Cmid, Hp*Wp + 2)    VMEM scratch: zero-padded intermediate
    """
    Wp = W + 2
    LWIN = H * Wp                     # per-tap contiguous window length
    border = Wp + 1                   # top row + first left-pad element

    def accum_taps(w_ref, read_window):
        # 9 accumulating tap matmuls; f32 accumulation on the MXU.
        acc = None
        for ky in range(3):
            for kx in range(3):
                t = ky * 3 + kx
                part = jnp.dot(w_ref[t], read_window(ky * Wp + kx),
                               preferred_element_type=jnp.float32)
                acc = part if acc is None else acc + part
        return acc

    # -------- stage 1: conv3x3 + (folded) BN + ReLU, channel-major ----------
    acc1 = accum_taps(w1_ref, lambda s: x_ref[0, :, pl.ds(s, LWIN)])
    h = jnp.maximum(acc1 + b1_ref[...], 0.0) * mask_ref[...]   # zero pad cols

    # Scatter h into the zero-bordered intermediate buffer: one dense interior
    # store + two O(perimeter) border zero stores (unconditional each step so
    # megacore batch partitioning stays correct).
    hpad_ref[:, pl.ds(0, border)] = jnp.zeros(
        (hpad_ref.shape[0], border), hpad_ref.dtype)
    hpad_ref[:, pl.ds(border, LWIN)] = h.astype(hpad_ref.dtype)
    hpad_ref[:, pl.ds(border + LWIN, border)] = jnp.zeros(
        (hpad_ref.shape[0], border), hpad_ref.dtype)

    # -------- stage 2: conv3x3 + (folded) BN + ReLU --------------------------
    acc2 = accum_taps(w2_ref, lambda s: hpad_ref[:, pl.ds(s, LWIN)])
    y = jnp.maximum(acc2 + b2_ref[...], 0.0)       # garbage cols dropped later
    o_ref[0] = y.astype(o_ref.dtype)


def _fold_bn(conv_b, gamma, beta, running_mean, running_var, eps=1e-5):
    scale = gamma / jnp.sqrt(running_var + eps)
    bias = (conv_b - running_mean) * scale + beta
    return scale, bias


def double_conv_forward(x_nchw, params, *, mxu_dtype=jnp.float32):
    """Matches DoubleConv.forward (eval-mode BN). x_nchw: (N, Cin, H, W)."""
    N, Cin, H, W = x_nchw.shape
    Cmid = params["w1"].shape[-1]
    Cout = params["w2"].shape[-1]
    Hp, Wp = H + 2, W + 2
    LWIN = H * Wp                 # window / output lane width (incl. 2 pad cols/row)
    HPW2 = Hp * Wp + 2            # padded flat length (+2 so the (2,2) tap fits)

    s1, b1 = _fold_bn(params["b1"], params["bn1_g"], params["bn1_b"],
                      params["bn1_m"], params["bn1_v"])
    s2, b2 = _fold_bn(params["b2"], params["bn2_g"], params["bn2_b"],
                      params["bn2_m"], params["bn2_v"])

    # Fold BN scale into the conv weights (host side): conv_{w*s}(x) == conv_w(x)*s
    w1f = (params["w1"] * s1[None, None, None, :]).astype(jnp.float32)
    w2f = (params["w2"] * s2[None, None, None, :]).astype(jnp.float32)
    # per-tap (Cout, Cin) weights, tap index t = ky*3 + kx
    w1_taps = jnp.transpose(w1f, (0, 1, 3, 2)).reshape(9, Cmid, Cin).astype(mxu_dtype)
    w2_taps = jnp.transpose(w2f, (0, 1, 3, 2)).reshape(9, Cout, Cmid).astype(mxu_dtype)
    b1_r = b1.reshape(Cmid, 1).astype(jnp.float32)
    b2_r = b2.reshape(Cout, 1).astype(jnp.float32)

    # Channel-major, flat, zero-padded input (the reshape after pad is free).
    xp = jnp.pad(x_nchw, ((0, 0), (0, 0), (1, 1), (1, 1)))
    xp = xp.reshape(N, Cin, Hp * Wp)
    xp = jnp.pad(xp, ((0, 0), (0, 0), (0, 2))).astype(mxu_dtype)

    # Valid-column mask: column j of a window corresponds to padded position
    # (y, x) with x = j % Wp; x in [W, W+2) are the padding columns.
    cols = jnp.arange(LWIN, dtype=jnp.int32) % Wp
    mask = (cols < W).astype(jnp.float32).reshape(1, LWIN)

    kernel = functools.partial(_double_conv_kernel, H=H, W=W)
    out = pl.pallas_call(
        kernel,
        out_shape=jax.ShapeDtypeStruct((N, Cout, LWIN), jnp.float32),
        grid_spec=pltpu.PrefetchScalarGridSpec(
            num_scalar_prefetch=0,
            grid=(N,),
            in_specs=[
                pl.BlockSpec((1, Cin, HPW2), lambda n: (n, 0, 0)),
                pl.BlockSpec((1, LWIN), lambda n: (0, 0)),
                pl.BlockSpec((9, Cmid, Cin), lambda n: (0, 0, 0)),
                pl.BlockSpec((Cmid, 1), lambda n: (0, 0)),
                pl.BlockSpec((9, Cout, Cmid), lambda n: (0, 0, 0)),
                pl.BlockSpec((Cout, 1), lambda n: (0, 0)),
            ],
            out_specs=pl.BlockSpec((1, Cout, LWIN), lambda n: (n, 0, 0)),
            scratch_shapes=[
                pltpu.VMEM((Cmid, HPW2), mxu_dtype),   # padded intermediate
            ],
        ),
        compiler_params=pltpu.CompilerParams(
            dimension_semantics=("parallel",)),
    )(xp, mask, w1_taps, b1_r, w2_taps, b2_r)

    # Strip the 2 padding columns per row; (N, Cout, H, W) == NCHW directly.
    return out.reshape(N, Cout, H, Wp)[:, :, :, :W]


def make_params(key, in_channels, mid_channels, out_channels):
    ks = jax.random.split(key, 10)
    # PyTorch conv weight layout is (Cout, Cin, kH, kW); store as (kH, kW, Cin, Cout).
    w1_t = 0.1 * jax.random.normal(ks[0], (mid_channels, in_channels, 3, 3), jnp.float32)
    w2_t = 0.1 * jax.random.normal(ks[1], (out_channels, mid_channels, 3, 3), jnp.float32)
    return {
        "w1": jnp.transpose(w1_t, (2, 3, 1, 0)),
        "b1": 0.05 * jax.random.normal(ks[2], (mid_channels,), jnp.float32),
        "bn1_g": 1.0 + 0.1 * jax.random.normal(ks[3], (mid_channels,), jnp.float32),
        "bn1_b": 0.05 * jax.random.normal(ks[4], (mid_channels,), jnp.float32),
        "bn1_m": 0.02 * jax.random.normal(ks[5], (mid_channels,), jnp.float32),
        "bn1_v": 1.0 + 0.1 * jnp.abs(jax.random.normal(ks[6], (mid_channels,), jnp.float32)),
        "w2": jnp.transpose(w2_t, (2, 3, 1, 0)),
        "b2": 0.05 * jax.random.normal(ks[7], (out_channels,), jnp.float32),
        "bn2_g": 1.0 + 0.1 * jax.random.normal(ks[8], (out_channels,), jnp.float32),
        "bn2_b": 0.05 * jax.random.normal(ks[9], (out_channels,), jnp.float32),
        "bn2_m": jnp.zeros((out_channels,), jnp.float32),
        "bn2_v": jnp.ones((out_channels,), jnp.float32),
    }


def _reference(x_nchw, params):
    """Plain-JAX reference (lax conv, NCHW, eval-mode BN) for a correctness check."""
    def conv_bn_relu(x, w_hwio, b, g, beta, m, v):
        w_oihw = jnp.transpose(w_hwio, (3, 2, 0, 1))
        y = jax.lax.conv_general_dilated(
            x, w_oihw, window_strides=(1, 1), padding=((1, 1), (1, 1)),
            dimension_numbers=("NCHW", "OIHW", "NCHW"))
        y = y + b[None, :, None, None]
        y = (y - m[None, :, None, None]) / jnp.sqrt(v[None, :, None, None] + 1e-5)
        y = y * g[None, :, None, None] + beta[None, :, None, None]
        return jnp.maximum(y, 0.0)

    h = conv_bn_relu(x_nchw, params["w1"], params["b1"], params["bn1_g"],
                     params["bn1_b"], params["bn1_m"], params["bn1_v"])
    return conv_bn_relu(h, params["w2"], params["b2"], params["bn2_g"],
                        params["bn2_b"], params["bn2_m"], params["bn2_v"])


if __name__ == "__main__":
    N, Cin, H, W = 2, 4, 16, 16
    Cmid, Cout = 8, 8

    key = jax.random.PRNGKey(0)
    kx, kp = jax.random.split(key)
    x = jax.random.normal(kx, (N, Cin, H, W), jnp.float32)
    params = make_params(kp, Cin, Cmid, Cout)

    ref = jax.block_until_ready(_reference(x, params))

    # f32 MXU operands: exact parity with the PyTorch float32 module.
    out = jax.block_until_ready(double_conv_forward(x, params))
    assert out.shape == (N, Cout, H, W)
    assert jnp.allclose(out, ref, rtol=1e-4, atol=1e-4)

    # bf16 MXU operands (v6e/v7x recommendation); f32 accumulation + elementwise.
    out_bf16 = jax.block_until_ready(
        double_conv_forward(x, params, mxu_dtype=jnp.bfloat16))
    assert out_bf16.shape == (N, Cout, H, W)
    assert jnp.allclose(out_bf16, ref, rtol=5e-2, atol=5e-2)

    print("KERNEL_OK")
</pallas_src>

<mosaic_0001>
module attributes {stable_mosaic.version = 11 : i64} {
  func.func @_double_conv_kernel(%arg0: i32, %arg1: memref<1x4x326xf32, #tpu.memory_space<vmem>>, %arg2: memref<1x288xf32, #tpu.memory_space<vmem>>, %arg3: memref<9x8x4xf32, #tpu.memory_space<vmem>>, %arg4: memref<8x1xf32, #tpu.memory_space<vmem>>, %arg5: memref<9x8x8xf32, #tpu.memory_space<vmem>>, %arg6: memref<8x1xf32, #tpu.memory_space<vmem>>, %arg7: memref<1x8x288xf32, #tpu.memory_space<vmem>>, %arg8: memref<8x326xf32, #tpu.memory_space<vmem>>) attributes {dimension_semantics = [#tpu.dimension_semantics<parallel>], iteration_bounds = array<i64: 2>, scalar_prefetch = 0 : i64, scratch_operands = 1 : i64, tpu.core_type = #tpu.core_type<tc>, window_params = [{transform_indices = @transform_0, window_bounds = array<i64: 1, 4, 326>}, {pipeline_mode = #tpu.pipeline_mode<synchronous>, transform_indices = @transform_1, window_bounds = array<i64: 1, 288>}, {pipeline_mode = #tpu.pipeline_mode<synchronous>, transform_indices = @transform_2, window_bounds = array<i64: 9, 8, 4>}, {pipeline_mode = #tpu.pipeline_mode<synchronous>, transform_indices = @transform_3, window_bounds = array<i64: 8, 1>}, {pipeline_mode = #tpu.pipeline_mode<synchronous>, transform_indices = @transform_4, window_bounds = array<i64: 9, 8, 8>}, {pipeline_mode = #tpu.pipeline_mode<synchronous>, transform_indices = @transform_5, window_bounds = array<i64: 8, 1>}, {transform_indices = @transform_6, window_bounds = array<i64: 1, 8, 288>}]} {
    %c0 = arith.constant 0 : index
    %c0_0 = arith.constant 0 : index
    %c0_1 = arith.constant 0 : index
    %0 = vector.load %arg3[%c0, %c0_0, %c0_1] : memref<9x8x4xf32, #tpu.memory_space<vmem>>, vector<1x8x4xf32>
    %1 = vector.shape_cast %0 : vector<1x8x4xf32> to vector<8x4xf32>
    %c0_2 = arith.constant 0 : index
    %c0_3 = arith.constant 0 : index
    %c0_4 = arith.constant 0 : index
    %2 = vector.load %arg1[%c0_2, %c0_3, %c0_4] : memref<1x4x326xf32, #tpu.memory_space<vmem>>, vector<1x4x288xf32>
    %3 = vector.shape_cast %2 : vector<1x4x288xf32> to vector<4x288xf32>
    %cst = arith.constant dense<0.000000e+00> : vector<8x288xf32>
    %4 = tpu.matmul %1, %3, %cst {dimension_numbers = #tpu.dot_dimension_numbers<[1], [0], [0], [1], [0, 0, 1, 1], [], []>} : vector<8x4xf32>, vector<4x288xf32>, vector<8x288xf32> -> vector<8x288xf32>
    %c1 = arith.constant 1 : index
    %c0_5 = arith.constant 0 : index
    %c0_6 = arith.constant 0 : index
    %5 = vector.load %arg3[%c1, %c0_5, %c0_6] : memref<9x8x4xf32, #tpu.memory_space<vmem>>, vector<1x8x4xf32>
    %6 = vector.shape_cast %5 : vector<1x8x4xf32> to vector<8x4xf32>
    %c0_7 = arith.constant 0 : index
    %c0_8 = arith.constant 0 : index
    %c1_9 = arith.constant 1 : index
    %7 = vector.load %arg1[%c0_7, %c0_8, %c1_9] : memref<1x4x326xf32, #tpu.memory_space<vmem>>, vector<1x4x288xf32>
    %8 = vector.shape_cast %7 : vector<1x4x288xf32> to vector<4x288xf32>
    %cst_10 = arith.constant dense<0.000000e+00> : vector<8x288xf32>
    %9 = tpu.matmul %6, %8, %cst_10 {dimension_numbers = #tpu.dot_dimension_numbers<[1], [0], [0], [1], [0, 0, 1, 1], [], []>} : vector<8x4xf32>, vector<4x288xf32>, vector<8x288xf32> -> vector<8x288xf32>
    %10 = arith.addf %4, %9 : vector<8x288xf32>
    %c2 = arith.constant 2 : index
    %c0_11 = arith.constant 0 : index
    %c0_12 = arith.constant 0 : index
    %11 = vector.load %arg3[%c2, %c0_11, %c0_12] : memref<9x8x4xf32, #tpu.memory_space<vmem>>, vector<1x8x4xf32>
    %12 = vector.shape_cast %11 : vector<1x8x4xf32> to vector<8x4xf32>
    %c0_13 = arith.constant 0 : index
    %c0_14 = arith.constant 0 : index
    %c2_15 = arith.constant 2 : index
    %13 = vector.load %arg1[%c0_13, %c0_14, %c2_15] : memref<1x4x326xf32, #tpu.memory_space<vmem>>, vector<1x4x288xf32>
    %14 = vector.shape_cast %13 : vector<1x4x288xf32> to vector<4x288xf32>
    %cst_16 = arith.constant dense<0.000000e+00> : vector<8x288xf32>
    %15 = tpu.matmul %12, %14, %cst_16 {dimension_numbers = #tpu.dot_dimension_numbers<[1], [0], [0], [1], [0, 0, 1, 1], [], []>} : vector<8x4xf32>, vector<4x288xf32>, vector<8x288xf32> -> vector<8x288xf32>
    %16 = arith.addf %10, %15 : vector<8x288xf32>
    %c3 = arith.constant 3 : index
    %c0_17 = arith.constant 0 : index
    %c0_18 = arith.constant 0 : index
    %17 = vector.load %arg3[%c3, %c0_17, %c0_18] : memref<9x8x4xf32, #tpu.memory_space<vmem>>, vector<1x8x4xf32>
    %18 = vector.shape_cast %17 : vector<1x8x4xf32> to vector<8x4xf32>
    %c0_19 = arith.constant 0 : index
    %c0_20 = arith.constant 0 : index
    %c18 = arith.constant 18 : index
    %19 = vector.load %arg1[%c0_19, %c0_20, %c18] : memref<1x4x326xf32, #tpu.memory_space<vmem>>, vector<1x4x288xf32>
    %20 = vector.shape_cast %19 : vector<1x4x288xf32> to vector<4x288xf32>
    %cst_21 = arith.constant dense<0.000000e+00> : vector<8x288xf32>
    %21 = tpu.matmul %18, %20, %cst_21 {dimension_numbers = #tpu.dot_dimension_numbers<[1], [0], [0], [1], [0, 0, 1, 1], [], []>} : vector<8x4xf32>, vector<4x288xf32>, vector<8x288xf32> -> vector<8x288xf32>
    %22 = arith.addf %16, %21 : vector<8x288xf32>
    %c4 = arith.constant 4 : index
    %c0_22 = arith.constant 0 : index
    %c0_23 = arith.constant 0 : index
    %23 = vector.load %arg3[%c4, %c0_22, %c0_23] : memref<9x8x4xf32, #tpu.memory_space<vmem>>, vector<1x8x4xf32>
    %24 = vector.shape_cast %23 : vector<1x8x4xf32> to vector<8x4xf32>
    %c0_24 = arith.constant 0 : index
    %c0_25 = arith.constant 0 : index
    %c19 = arith.constant 19 : index
    %25 = vector.load %arg1[%c0_24, %c0_25, %c19] : memref<1x4x326xf32, #tpu.memory_space<vmem>>, vector<1x4x288xf32>
    %26 = vector.shape_cast %25 : vector<1x4x288xf32> to vector<4x288xf32>
    %cst_26 = arith.constant dense<0.000000e+00> : vector<8x288xf32>
    %27 = tpu.matmul %24, %26, %cst_26 {dimension_numbers = #tpu.dot_dimension_numbers<[1], [0], [0], [1], [0, 0, 1, 1], [], []>} : vector<8x4xf32>, vector<4x288xf32>, vector<8x288xf32> -> vector<8x288xf32>
    %28 = arith.addf %22, %27 : vector<8x288xf32>
    %c5 = arith.constant 5 : index
    %c0_27 = arith.constant 0 : index
    %c0_28 = arith.constant 0 : index
    %29 = vector.load %arg3[%c5, %c0_27, %c0_28] : memref<9x8x4xf32, #tpu.memory_space<vmem>>, vector<1x8x4xf32>
    %30 = vector.shape_cast %29 : vector<1x8x4xf32> to vector<8x4xf32>
    %c0_29 = arith.constant 0 : index
    %c0_30 = arith.constant 0 : index
    %c20 = arith.constant 20 : index
    %31 = vector.load %arg1[%c0_29, %c0_30, %c20] : memref<1x4x326xf32, #tpu.memory_space<vmem>>, vector<1x4x288xf32>
    %32 = vector.shape_cast %31 : vector<1x4x288xf32> to vector<4x288xf32>
    %cst_31 = arith.constant dense<0.000000e+00> : vector<8x288xf32>
    %33 = tpu.matmul %30, %32, %cst_31 {dimension_numbers = #tpu.dot_dimension_numbers<[1], [0], [0], [1], [0, 0, 1, 1], [], []>} : vector<8x4xf32>, vector<4x288xf32>, vector<8x288xf32> -> vector<8x288xf32>
    %34 = arith.addf %28, %33 : vector<8x288xf32>
    %c6 = arith.constant 6 : index
    %c0_32 = arith.constant 0 : index
    %c0_33 = arith.constant 0 : index
    %35 = vector.load %arg3[%c6, %c0_32, %c0_33] : memref<9x8x4xf32, #tpu.memory_space<vmem>>, vector<1x8x4xf32>
    %36 = vector.shape_cast %35 : vector<1x8x4xf32> to vector<8x4xf32>
    %c0_34 = arith.constant 0 : index
    %c0_35 = arith.constant 0 : index
    %c36 = arith.constant 36 : index
    %37 = vector.load %arg1[%c0_34, %c0_35, %c36] : memref<1x4x326xf32, #tpu.memory_space<vmem>>, vector<1x4x288xf32>
    %38 = vector.shape_cast %37 : vector<1x4x288xf32> to vector<4x288xf32>
    %cst_36 = arith.constant dense<0.000000e+00> : vector<8x288xf32>
    %39 = tpu.matmul %36, %38, %cst_36 {dimension_numbers = #tpu.dot_dimension_numbers<[1], [0], [0], [1], [0, 0, 1, 1], [], []>} : vector<8x4xf32>, vector<4x288xf32>, vector<8x288xf32> -> vector<8x288xf32>
    %40 = arith.addf %34, %39 : vector<8x288xf32>
    %c7 = arith.constant 7 : index
    %c0_37 = arith.constant 0 : index
    %c0_38 = arith.constant 0 : index
    %41 = vector.load %arg3[%c7, %c0_37, %c0_38] : memref<9x8x4xf32, #tpu.memory_space<vmem>>, vector<1x8x4xf32>
    %42 = vector.shape_cast %41 : vector<1x8x4xf32> to vector<8x4xf32>
    %c0_39 = arith.constant 0 : index
    %c0_40 = arith.constant 0 : index
    %c37 = arith.constant 37 : index
    %43 = vector.load %arg1[%c0_39, %c0_40, %c37] : memref<1x4x326xf32, #tpu.memory_space<vmem>>, vector<1x4x288xf32>
    %44 = vector.shape_cast %43 : vector<1x4x288xf32> to vector<4x288xf32>
    %cst_41 = arith.constant dense<0.000000e+00> : vector<8x288xf32>
    %45 = tpu.matmul %42, %44, %cst_41 {dimension_numbers = #tpu.dot_dimension_numbers<[1], [0], [0], [1], [0, 0, 1, 1], [], []>} : vector<8x4xf32>, vector<4x288xf32>, vector<8x288xf32> -> vector<8x288xf32>
    %46 = arith.addf %40, %45 : vector<8x288xf32>
    %c8 = arith.constant 8 : index
    %c0_42 = arith.constant 0 : index
    %c0_43 = arith.constant 0 : index
    %47 = vector.load %arg3[%c8, %c0_42, %c0_43] : memref<9x8x4xf32, #tpu.memory_space<vmem>>, vector<1x8x4xf32>
    %48 = vector.shape_cast %47 : vector<1x8x4xf32> to vector<8x4xf32>
    %c0_44 = arith.constant 0 : index
    %c0_45 = arith.constant 0 : index
    %c38 = arith.constant 38 : index
    %49 = vector.load %arg1[%c0_44, %c0_45, %c38] : memref<1x4x326xf32, #tpu.memory_space<vmem>>, vector<1x4x288xf32>
    %50 = vector.shape_cast %49 : vector<1x4x288xf32> to vector<4x288xf32>
    %cst_46 = arith.constant dense<0.000000e+00> : vector<8x288xf32>
    %51 = tpu.matmul %48, %50, %cst_46 {dimension_numbers = #tpu.dot_dimension_numbers<[1], [0], [0], [1], [0, 0, 1, 1], [], []>} : vector<8x4xf32>, vector<4x288xf32>, vector<8x288xf32> -> vector<8x288xf32>
    %52 = arith.addf %46, %51 : vector<8x288xf32>
    %c0_47 = arith.constant 0 : index
    %c0_48 = arith.constant 0 : index
    %53 = vector.load %arg4[%c0_47, %c0_48] : memref<8x1xf32, #tpu.memory_space<vmem>>, vector<8x1xf32>
    %54 = vector.broadcast %53 : vector<8x1xf32> to vector<8x288xf32>
    %55 = arith.addf %52, %54 : vector<8x288xf32>
    %cst_49 = arith.constant 0.000000e+00 : f32
    %56 = vector.broadcast %cst_49 : f32 to vector<8x288xf32>
    %57 = arith.maximumf %55, %56 : vector<8x288xf32>
    %c0_50 = arith.constant 0 : index
    %c0_51 = arith.constant 0 : index
    %58 = vector.load %arg2[%c0_50, %c0_51] : memref<1x288xf32, #tpu.memory_space<vmem>>, vector<1x288xf32>
    %59 = vector.broadcast %58 : vector<1x288xf32> to vector<8x288xf32>
    %60 = arith.mulf %57, %59 : vector<8x288xf32>
    %cst_52 = arith.constant 0.000000e+00 : f32
    %61 = vector.broadcast %cst_52 : f32 to vector<8x19xf32>
    %c0_53 = arith.constant 0 : index
    %c0_54 = arith.constant 0 : index
    %62 = vector.load %arg8[%c0_53, %c0_54] : memref<8x326xf32, #tpu.memory_space<vmem>>, vector<8x19xf32>
    tpu.vector_store %arg8[%c0_53, %c0_54], %61 {strides = array<i32>} : memref<8x326xf32, #tpu.memory_space<vmem>>, vector<8x19xf32>,
    %c0_55 = arith.constant 0 : index
    %c19_56 = arith.constant 19 : index
    %63 = vector.load %arg8[%c0_55, %c19_56] : memref<8x326xf32, #tpu.memory_space<vmem>>, vector<8x288xf32>
    tpu.vector_store %arg8[%c0_55, %c19_56], %60 {strides = array<i32>} : memref<8x326xf32, #tpu.memory_space<vmem>>, vector<8x288xf32>,
    %cst_57 = arith.constant 0.000000e+00 : f32
    %64 = vector.broadcast %cst_57 : f32 to vector<8x19xf32>
    %c0_58 = arith.constant 0 : index
    %c307 = arith.constant 307 : index
    %65 = vector.load %arg8[%c0_58, %c307] : memref<8x326xf32, #tpu.memory_space<vmem>>, vector<8x19xf32>
    tpu.vector_store %arg8[%c0_58, %c307], %64 {strides = array<i32>} : memref<8x326xf32, #tpu.memory_space<vmem>>, vector<8x19xf32>,
    %c0_59 = arith.constant 0 : index
    %c0_60 = arith.constant 0 : index
    %c0_61 = arith.constant 0 : index
    %66 = vector.load %arg5[%c0_59, %c0_60, %c0_61] : memref<9x8x8xf32, #tpu.memory_space<vmem>>, vector<1x8x8xf32>
    %67 = vector.shape_cast %66 : vector<1x8x8xf32> to vector<8x8xf32>
    %c0_62 = arith.constant 0 : index
    %c0_63 = arith.constant 0 : index
    %68 = vector.load %arg8[%c0_62, %c0_63] : memref<8x326xf32, #tpu.memory_space<vmem>>, vector<8x288xf32>
    %cst_64 = arith.constant dense<0.000000e+00> : vector<8x288xf32>
    %69 = tpu.matmul %67, %68, %cst_64 {dimension_numbers = #tpu.dot_dimension_numbers<[1], [0], [0], [1], [0, 0, 1, 1], [], []>} : vector<8x8xf32>, vector<8x288xf32>, vector<8x288xf32> -> vector<8x288xf32>
    %c1_65 = arith.constant 1 : index
    %c0_66 = arith.constant 0 : index
    %c0_67 = arith.constant 0 : index
    %70 = vector.load %arg5[%c1_65, %c0_66, %c0_67] : memref<9x8x8xf32, #tpu.memory_space<vmem>>, vector<1x8x8xf32>
    %71 = vector.shape_cast %70 : vector<1x8x8xf32> to vector<8x8xf32>
    %c0_68 = arith.constant 0 : index
    %c1_69 = arith.constant 1 : index
    %72 = vector.load %arg8[%c0_68, %c1_69] : memref<8x326xf32, #tpu.memory_space<vmem>>, vector<8x288xf32>
    %cst_70 = arith.constant dense<0.000000e+00> : vector<8x288xf32>
    %73 = tpu.matmul %71, %72, %cst_70 {dimension_numbers = #tpu.dot_dimension_numbers<[1], [0], [0], [1], [0, 0, 1, 1], [], []>} : vector<8x8xf32>, vector<8x288xf32>, vector<8x288xf32> -> vector<8x288xf32>
    %74 = arith.addf %69, %73 : vector<8x288xf32>
    %c2_71 = arith.constant 2 : index
    %c0_72 = arith.constant 0 : index
    %c0_73 = arith.constant 0 : index
    %75 = vector.load %arg5[%c2_71, %c0_72, %c0_73] : memref<9x8x8xf32, #tpu.memory_space<vmem>>, vector<1x8x8xf32>
    %76 = vector.shape_cast %75 : vector<1x8x8xf32> to vector<8x8xf32>
    %c0_74 = arith.constant 0 : index
    %c2_75 = arith.constant 2 : index
    %77 = vector.load %arg8[%c0_74, %c2_75] : memref<8x326xf32, #tpu.memory_space<vmem>>, vector<8x288xf32>
    %cst_76 = arith.constant dense<0.000000e+00> : vector<8x288xf32>
    %78 = tpu.matmul %76, %77, %cst_76 {dimension_numbers = #tpu.dot_dimension_numbers<[1], [0], [0], [1], [0, 0, 1, 1], [], []>} : vector<8x8xf32>, vector<8x288xf32>, vector<8x288xf32> -> vector<8x288xf32>
    %79 = arith.addf %74, %78 : vector<8x288xf32>
    %c3_77 = arith.constant 3 : index
    %c0_78 = arith.constant 0 : index
    %c0_79 = arith.constant 0 : index
    %80 = vector.load %arg5[%c3_77, %c0_78, %c0_79] : memref<9x8x8xf32, #tpu.memory_space<vmem>>, vector<1x8x8xf32>
    %81 = vector.shape_cast %80 : vector<1x8x8xf32> to vector<8x8xf32>
    %c0_80 = arith.constant 0 : index
    %c18_81 = arith.constant 18 : index
    %82 = vector.load %arg8[%c0_80, %c18_81] : memref<8x326xf32, #tpu.memory_space<vmem>>, vector<8x288xf32>
    %cst_82 = arith.constant dense<0.000000e+00> : vector<8x288xf32>
    %83 = tpu.matmul %81, %82, %cst_82 {dimension_numbers = #tpu.dot_dimension_numbers<[1], [0], [0], [1], [0, 0, 1, 1], [], []>} : vector<8x8xf32>, vector<8x288xf32>, vector<8x288xf32> -> vector<8x288xf32>
    %84 = arith.addf %79, %83 : vector<8x288xf32>
    %c4_83 = arith.constant 4 : index
    %c0_84 = arith.constant 0 : index
    %c0_85 = arith.constant 0 : index
    %85 = vector.load %arg5[%c4_83, %c0_84, %c0_85] : memref<9x8x8xf32, #tpu.memory_space<vmem>>, vector<1x8x8xf32>
    %86 = vector.shape_cast %85 : vector<1x8x8xf32> to vector<8x8xf32>
    %c0_86 = arith.constant 0 : index
    %c19_87 = arith.constant 19 : index
    %87 = vector.load %arg8[%c0_86, %c19_87] : memref<8x326xf32, #tpu.memory_space<vmem>>, vector<8x288xf32>
    %cst_88 = arith.constant dense<0.000000e+00> : vector<8x288xf32>
    %88 = tpu.matmul %86, %87, %cst_88 {dimension_numbers = #tpu.dot_dimension_numbers<[1], [0], [0], [1], [0, 0, 1, 1], [], []>} : vector<8x8xf32>, vector<8x288xf32>, vector<8x288xf32> -> vector<8x288xf32>
    %89 = arith.addf %84, %88 : vector<8x288xf32>
    %c5_89 = arith.constant 5 : index
    %c0_90 = arith.constant 0 : index
    %c0_91 = arith.constant 0 : index
    %90 = vector.load %arg5[%c5_89, %c0_90, %c0_91] : memref<9x8x8xf32, #tpu.memory_space<vmem>>, vector<1x8x8xf32>
    %91 = vector.shape_cast %90 : vector<1x8x8xf32> to vector<8x8xf32>
    %c0_92 = arith.constant 0 : index
    %c20_93 = arith.constant 20 : index
    %92 = vector.load %arg8[%c0_92, %c20_93] : memref<8x326xf32, #tpu.memory_space<vmem>>, vector<8x288xf32>
    %cst_94 = arith.constant dense<0.000000e+00> : vector<8x288xf32>
    %93 = tpu.matmul %91, %92, %cst_94 {dimension_numbers = #tpu.dot_dimension_numbers<[1], [0], [0], [1], [0, 0, 1, 1], [], []>} : vector<8x8xf32>, vector<8x288xf32>, vector<8x288xf32> -> vector<8x288xf32>
    %94 = arith.addf %89, %93 : vector<8x288xf32>
    %c6_95 = arith.constant 6 : index
    %c0_96 = arith.constant 0 : index
    %c0_97 = arith.constant 0 : index
    %95 = vector.load %arg5[%c6_95, %c0_96, %c0_97] : memref<9x8x8xf32, #tpu.memory_space<vmem>>, vector<1x8x8xf32>
    %96 = vector.shape_cast %95 : vector<1x8x8xf32> to vector<8x8xf32>
    %c0_98 = arith.constant 0 : index
    %c36_99 = arith.constant 36 : index
    %97 = vector.load %arg8[%c0_98, %c36_99] : memref<8x326xf32, #tpu.memory_space<vmem>>, vector<8x288xf32>
    %cst_100 = arith.constant dense<0.000000e+00> : vector<8x288xf32>
    %98 = tpu.matmul %96, %97, %cst_100 {dimension_numbers = #tpu.dot_dimension_numbers<[1], [0], [0], [1], [0, 0, 1, 1], [], []>} : vector<8x8xf32>, vector<8x288xf32>, vector<8x288xf32> -> vector<8x288xf32>
    %99 = arith.addf %94, %98 : vector<8x288xf32>
    %c7_101 = arith.constant 7 : index
    %c0_102 = arith.constant 0 : index
    %c0_103 = arith.constant 0 : index
    %100 = vector.load %arg5[%c7_101, %c0_102, %c0_103] : memref<9x8x8xf32, #tpu.memory_space<vmem>>, vector<1x8x8xf32>
    %101 = vector.shape_cast %100 : vector<1x8x8xf32> to vector<8x8xf32>
    %c0_104 = arith.constant 0 : index
    %c37_105 = arith.constant 37 : index
    %102 = vector.load %arg8[%c0_104, %c37_105] : memref<8x326xf32, #tpu.memory_space<vmem>>, vector<8x288xf32>
    %cst_106 = arith.constant dense<0.000000e+00> : vector<8x288xf32>
    %103 = tpu.matmul %101, %102, %cst_106 {dimension_numbers = #tpu.dot_dimension_numbers<[1], [0], [0], [1], [0, 0, 1, 1], [], []>} : vector<8x8xf32>, vector<8x288xf32>, vector<8x288xf32> -> vector<8x288xf32>
    %104 = arith.addf %99, %103 : vector<8x288xf32>
    %c8_107 = arith.constant 8 : index
    %c0_108 = arith.constant 0 : index
    %c0_109 = arith.constant 0 : index
    %105 = vector.load %arg5[%c8_107, %c0_108, %c0_109] : memref<9x8x8xf32, #tpu.memory_space<vmem>>, vector<1x8x8xf32>
    %106 = vector.shape_cast %105 : vector<1x8x8xf32> to vector<8x8xf32>
    %c0_110 = arith.constant 0 : index
    %c38_111 = arith.constant 38 : index
    %107 = vector.load %arg8[%c0_110, %c38_111] : memref<8x326xf32, #tpu.memory_space<vmem>>, vector<8x288xf32>
    %cst_112 = arith.constant dense<0.000000e+00> : vector<8x288xf32>
    %108 = tpu.matmul %106, %107, %cst_112 {dimension_numbers = #tpu.dot_dimension_numbers<[1], [0], [0], [1], [0, 0, 1, 1], [], []>} : vector<8x8xf32>, vector<8x288xf32>, vector<8x288xf32> -> vector<8x288xf32>
    %109 = arith.addf %104, %108 : vector<8x288xf32>
    %c0_113 = arith.constant 0 : index
    %c0_114 = arith.constant 0 : index
    %110 = vector.load %arg6[%c0_113, %c0_114] : memref<8x1xf32, #tpu.memory_space<vmem>>, vector<8x1xf32>
    %111 = vector.broadcast %110 : vector<8x1xf32> to vector<8x288xf32>
    %112 = arith.addf %109, %111 : vector<8x288xf32>
    %cst_115 = arith.constant 0.000000e+00 : f32
    %113 = vector.broadcast %cst_115 : f32 to vector<8x288xf32>
    %114 = arith.maximumf %112, %113 : vector<8x288xf32>
    %c0_116 = arith.constant 0 : index
    %c0_117 = arith.constant 0 : index
    %c0_118 = arith.constant 0 : index
    %115 = vector.load %arg7[%c0_116, %c0_117, %c0_118] : memref<1x8x288xf32, #tpu.memory_space<vmem>>, vector<1x8x288xf32>
    %116 = vector.shape_cast %115 : vector<1x8x288xf32> to vector<8x288xf32>
    %117 = vector.shape_cast %114 : vector<8x288xf32> to vector<1x8x288xf32>
    tpu.vector_store %arg7[%c0_116, %c0_117, %c0_118], %117 {strides = array<i32>} : memref<1x8x288xf32, #tpu.memory_space<vmem>>, vector<1x8x288xf32>,
    return
  }
  func.func @transform_0(%arg0: i32) -> (i32, i32, i32) {
    %c0_i32 = arith.constant 0 : i32
    %c0_i32_0 = arith.constant 0 : i32
    %c0_i32_1 = arith.constant 0 : i32
    return %arg0, %c0_i32, %c0_i32_0 : i32, i32, i32
  }
  func.func @transform_1(%arg0: i32) -> (i32, i32) {
    %c0_i32 = arith.constant 0 : i32
    %c0_i32_0 = arith.constant 0 : i32
    %c0_i32_1 = arith.constant 0 : i32
    return %c0_i32, %c0_i32_0 : i32, i32
  }
  func.func @transform_2(%arg0: i32) -> (i32, i32, i32) {
    %c0_i32 = arith.constant 0 : i32
    %c0_i32_0 = arith.constant 0 : i32
    %c0_i32_1 = arith.constant 0 : i32
    %c0_i32_2 = arith.constant 0 : i32
    return %c0_i32, %c0_i32_0, %c0_i32_1 : i32, i32, i32
  }
  func.func @transform_3(%arg0: i32) -> (i32, i32) {
    %c0_i32 = arith.constant 0 : i32
    %c0_i32_0 = arith.constant 0 : i32
    %c0_i32_1 = arith.constant 0 : i32
    return %c0_i32, %c0_i32_0 : i32, i32
  }
  func.func @transform_4(%arg0: i32) -> (i32, i32, i32) {
    %c0_i32 = arith.constant 0 : i32
    %c0_i32_0 = arith.constant 0 : i32
    %c0_i32_1 = arith.constant 0 : i32
    %c0_i32_2 = arith.constant 0 : i32
    return %c0_i32, %c0_i32_0, %c0_i32_1 : i32, i32, i32
  }
  func.func @transform_5(%arg0: i32) -> (i32, i32) {
    %c0_i32 = arith.constant 0 : i32
    %c0_i32_0 = arith.constant 0 : i32
    %c0_i32_1 = arith.constant 0 : i32
    return %c0_i32, %c0_i32_0 : i32, i32
  }
  func.func @transform_6(%arg0: i32) -> (i32, i32, i32) {
    %c0_i32 = arith.constant 0 : i32
    %c0_i32_0 = arith.constant 0 : i32
    %c0_i32_1 = arith.constant 0 : i32
    return %arg0, %c0_i32, %c0_i32_0 : i32, i32, i32
  }
}

</mosaic_0001>

<bundles_post_ra>
// kernel: tpu_custom_call.1
= control target key start
LH: loop header
LB: loop body
LE: loop exit
PB: predicated region body
PF: predicated region fallthrough
CT: control target
= control target key end

     0   :  { %11 = vsyncpa [#allocation4], 0  ;;  %s4151_s0 = inlined_call_operand.vmem [shape: f32[2,4,326], index: 0, kind: input, shape index: {}]   ;;  %s4152_s1 = inlined_call_operand.vmem [shape: f32[1,288], index: 1, kind: input, shape index: {}]   ;;  %s4153_s2 = inlined_call_operand.vmem [shape: f32[9,8,4], index: 2, kind: input, shape index: {}]   ;;  %s4154_s3 = inlined_call_operand.vmem [shape: f32[8,1], index: 3, kind: input, shape index: {}]   ;;  %s4155_s4 = inlined_call_operand.vmem [shape: f32[9,8,8], index: 4, kind: input, shape index: {}]   ;;  %s4156_s5 = inlined_call_operand.vmem [shape: f32[8,1], index: 5, kind: input, shape index: {}]   ;;  %s4157_s6 = inlined_call_operand.hbm [shape: f32[2,8,288], index: 6, kind: output, shape index: {}]  }
   0x1   :  { %13 = vsyncpa [#allocation4 + $0x1], 0  ;;  %s3740_s21 = smov 0   ;;  %s3742_s22 = smov 0  }
   0x2   :  { %s3744_s23 = smov 0   ;;  %s3746_s24 = smov 0  }
   0x3 LB: > { %s3761_s25 = sadd.s32 4294967295, %s3690_s24   ;;  %s3326_s26 = sadd.s32 4294967294, %s3690_s24   ;;  %s3690_s24 = sphi %s3746_s24, %s4163_s24   ;;  %s3686_s23 = sphi %s3744_s23, %s4162_s23   ;;  %s3682_s22 = sphi %s3742_s22, %s4161_s22   ;;  %s3678_s21 = sphi %s3740_s21, %s4160_s21  }
   0x4   : > { %s3765_s27 = sadd.s32 1, %s3690_s24   ;;  %s157_s28 = sadd.s32 1, %s3686_s23 }
   0x5   : > { %s154_s29 = ssub.s32 %s3690_s24, %s3765_s27  ;;  %p167_p0 = scmp.ne.s32.totalorder %s3686_s23, %s3682_s22 }
   0x6   : > { %p155_p1 = scmp.eq.s32.totalorder %s154_s29, 0  ;;  %p168_p2 = scmp.eq.s32.totalorder %s3761_s25, 1 }
   0x7   : > { %p173_p3 = scmp.ne.s32.totalorder %s3682_s22, %s3678_s21  ;;  %p174_p4 = scmp.eq.s32.totalorder %s3326_s26, 1 }
   0x8   : > { %s3776_s30 = scalar_select %p155_p1, %s3686_s23, %s157_s28  }
   0x9   : > { %p3778_p5 = por %p168_p2, %p167_p0  ;;  %p3782_p6 = por %p174_p4, %p173_p3 }
   0xa   : > { %p3329_p7 = scmp.ge.s32.totalorder %s3690_s24, 1  ;;  %p215_p8 = scmp.lt.s32.totalorder %s3690_s24, 3 }
   0xc   : > { %p216_p9 = pnand %p3329_p7, %p215_p8 }
   0xd   : > { %p245_p10 = scmp.lt.s32.totalorder (!%p216_p9), %s3761_s25, 1  ;;  %v3692_v0 = vmov (!%p216_p9), 0.0   ;;  %vm3693_vm0 = vmmov (!%p216_p9), 0   ;;  %s3694_s14 = smov (!%p216_p9), 127   ;;  %v1752_v11 = vld [vmem:[%s4154_s3] sm:$0xff] (!%p216_p9)  ;;  %v3702_v12 = vmov (!%p216_p9), 0  }
   0xe   : > { %219 = sbr.rel (%p216_p9) target bundleno = 976 (0x3d0), region = 44  ;;  %3449 = vmatprep.subr.mxu1 (!%p216_p9), %v3692_v0  ;;  %342 = vmatprep.mubr.f32.mxu0 (!%p216_p9), %v3692_v0  ;;  %s3695_s15 = smov (!%p216_p9), 126   ;;  %vm271_vm1 = vcmask (!%p216_p9), 1043456   ;;  %vm264_vm2 = vcmask (!%p216_p9), 1039360   ;;  %v3331_v18 = vld [vmem:[%s4153_s2 + $0x8] sm:$0xff] (!%p216_p9)  ;;  %vm267_vm3 = vcmask (!%p216_p9), 31744  }
   0xf   : > { %3451 = vmatprep.mubr.msk.f32.mxu1 (!%p216_p9), %vm3693_vm0, %v3692_v0  ;;  %s3696_s16 = smov (!%p216_p9), 110   ;;  %s3697_s17 = smov (!%p216_p9), 109   ;;  %3625 = vset.pattern.permute.xlu0 (!%p216_p9), %v3702_v12  ;;  %vm582_vm4 = vcmask (!%p216_p9), 1031168   ;;  %v250_v24 = vld [vmem:[%s4153_s2] sm:$0xff] (!%p216_p9)  ;;  %vm751_vm5 = vcmask (!%p216_p9), 900096   ;;  %v3342_v29 = vld [vmem:[%s4153_s2 + $0x10] sm:$0xff] (!%p216_p9) }
  0x10   : > { %s3698_s18 = smov (!%p216_p9), 108   ;;  %s3699_s19 = smov (!%p216_p9), 92   ;;  %3626 = vset.pattern.permute.xlu1 (!%p216_p9), %v3702_v12  ;;  %v3348_v32 = vld [vmem:[%s4153_s2 + $0x18] sm:$0xff] (!%p216_p9)  ;;  %vm920_vm6 = vcmask (!%p216_p9), 891904   ;;  %v3354_v34 = vld [vmem:[%s4153_s2 + $0x20] sm:$0xff] (!%p216_p9)  ;;  %v3360_v39 = vld [vmem:[%s4153_s2 + $0x28] sm:$0xff] (!%p216_p9) }
  0x11   : > { %s3700_s20 = smov (!%p216_p9), 91   ;;  %s3701_s26 = smov (!%p216_p9), 90   ;;  %vm1089_vm7 = vcmask (!%p216_p9), 883712   ;;  %v3366_v46 = vld [vmem:[%s4153_s2 + $0x30] sm:$0xff] (!%p216_p9)  ;;  %vm1258_vm8 = vcmask (!%p216_p9), 752640   ;;  %v3372_v49 = vld [vmem:[%s4153_s2 + $0x38] sm:$0xff] (!%p216_p9) }
  0x12   : > { %v3378_v53 = vld [vmem:[%s4153_s2 + $0x40] sm:$0xff] (!%p216_p9)  ;;  %vm1427_vm9 = vcmask (!%p216_p9), 744448   ;;  %vm1596_vm10 = vcmask (!%p216_p9), 736256   ;;  %vm1784_vm11 = vcmask (!%p216_p9), 154624   ;;  %s3703_s29 = smov (!%p216_p9), 19   ;;  %vm1800_vm12 = vcmask (!%p216_p9), 1047704  }
  0x13   : > { %1785 = vst.msk [vmem:[#allocation2] sm:$0xff] (!%p216_p9), %vm1784_vm11, %v3692_v0  ;;  %vm1803_vm13 = vcmask (!%p216_p9), 416768   ;;  %vm1805_vm14 = vcmask (!%p216_p9), 572824   ;;  %vm1827_vm15 = vcmask (!%p216_p9), 64512  }
  0x15   : > { %s246_s9 = scalar_select %p245_p10, %s3761_s25, 1 }
  0x17   : > { %s3572_s10 = smul.u32 12, %s246_s9 }
  0x18   : > { %s3573_s9 = smul.u32 384, %s3761_s25 }
  0x19   : > { %s3795_s13 = scalar_lea.vmem %s4151_s0, %s3572_s10 }
  0x1a   : > { %v3800_v1 = vld [vmem:[%s3795_s13] sm:$0xff]  ;;  %v3808_v3 = vld [vmem:[%s3795_s13 + $0x8] sm:$0xf] }
  0x1b   : > { %258 = vrot.lane.b32.xlu1 %v3800_v1, %s3694_s14  ;;  %v257_v2 = vcombine.high %v3800_v1, %v3800_v1  ;;  %v572_v4 = vld [vmem:[%s3795_s13 + $0x8] sm:$0xf] }
  0x1c   : > { %v741_v5 = vld [vmem:[%s3795_s13 + $0x8] sm:$0xf] }
  0x1d   : > { %260 = vrot.lane.b32.xlu0 %v257_v2, %s3694_s14  ;;  %v910_v6 = vld [vmem:[%s3795_s13 + $0x8] sm:$0xf] }
  0x1e   : > { %v1079_v7 = vld [vmem:[%s3795_s13 + $0x8] sm:$0xf] }
  0x1f   : > { %578 = vrot.lane.b32.xlu1 %v257_v2, %s3695_s15  ;;  %v1248_v8 = vld [vmem:[%s3795_s13 + $0x8] sm:$0xf] }
  0x20   : > { %v1417_v9 = vld [vmem:[%s3795_s13 + $0x8] sm:$0xf] }
  0x21   : > { %262 = vrot.lane.b32.xlu0 %v3808_v3, %s3694_s14  ;;  %v1586_v10 = vld [vmem:[%s3795_s13 + $0x8] sm:$0xf]  ;;  %s4109_s13 = scalar_lea.hbm %s4157_s6, %s3573_s9 }
  0x23   : > { %576 = vrot.lane.b32.xlu1 %v3800_v1, %s3695_s15 }
  0x25   : > { %580 = vrot.lane.b32.xlu0 %v572_v4, %s3695_s15 }
  0x27   : > { %749 = vrot.lane.b32.xlu1 %v741_v5, %s3696_s16 }
  0x29   : > { %747 = vrot.lane.b32.xlu0 %v257_v2, %s3696_s16 }
  0x2b   : > { %916 = vrot.lane.b32.xlu1 %v257_v2, %s3697_s17 }
  0x2d   : > { %745 = vrot.lane.b32.xlu0 %v3800_v1, %s3696_s16 }
  0x2f   : > { %914 = vrot.lane.b32.xlu1 %v3800_v1, %s3697_s17 }
  0x31   : > { %918 = vrot.lane.b32.xlu0 %v910_v6, %s3697_s17 }
  0x33   : > { %1087 = vrot.lane.b32.xlu1 %v1079_v7, %s3698_s18 }
  0x35   : > { %1085 = vrot.lane.b32.xlu0 %v257_v2, %s3698_s18 }
  0x37   : > { %1254 = vrot.lane.b32.xlu1 %v257_v2, %s3699_s19 }
  0x39   : > { %1083 = vrot.lane.b32.xlu0 %v3800_v1, %s3698_s18 }
  0x3b   : > { %1252 = vrot.lane.b32.xlu1 %v3800_v1, %s3699_s19 }
  0x3d   : > { %1256 = vrot.lane.b32.xlu0 %v1248_v8, %s3699_s19 }
  0x3f   : > { %1425 = vrot.lane.b32.xlu1 %v1417_v9, %s3700_s20 }
  0x41   : > { %1423 = vrot.lane.b32.xlu0 %v257_v2, %s3700_s20 }
  0x43   : > { %1592 = vrot.lane.b32.xlu1 %v257_v2, %s3701_s26 }
  0x45   : > { %1421 = vrot.lane.b32.xlu0 %v3800_v1, %s3700_s20 }
  0x47   : > { %1590 = vrot.lane.b32.xlu1 %v3800_v1, %s3701_s26 }
  0x49   : > { %1594 = vrot.lane.b32.xlu0 %v1586_v10, %s3701_s26 }
  0x4d   : > { %1755 = vperm.xlu0 %3625, %v1752_v11  }
  0x8d   : > { %v259_v13 = vpop.permute.xlu1 %258 }
  0x8f   : > { %v261_v14 = vpop.permute.xlu0 %260 }
  0x90   : > { %v265_v19 = vsel %vm264_vm2, %v259_v13, %v261_v14 }
  0x91   : > { %v579_v15 = vpop.permute.xlu1 %578 }
  0x93   : > { %v263_v16 = vpop.permute.xlu0 %262 }
  0x94   : > { %3450 = vmatpush3.msk.msra.mxu1 %vm271_vm1, %v263_v16  ;;  %v266_v17 = vsel %vm264_vm2, %v261_v14, %v263_v16 }
  0x95   : > { %3332 = vmatprep.subr.msk.mxu0 %vm271_vm1, %v266_v17  ;;  %v577_v20 = vpop.permute.xlu1 %576  ;;  %3452 = vmatmul.mubr.msk.f32.vlgmr.msra.gmra.mrb[0].mxu1 %vm267_vm3, %v3331_v18 }
  0x96   : > { %3333 = vmatpush1.msk.msra.mxu0 %vm271_vm1, %v265_v19  ;;  %3454 = vmatprep.subr.mxu1 %v3692_v0  ;;  %v583_v26 = vsel %vm582_vm4, %v577_v20, %v579_v15 }
  0x97   : > { %3334 = vmatmul.mubr.msk.f32.vlgmr.msra.gmra.mrb[0].mxu0 %vm267_vm3, %v3331_v18  ;;  %3337 = vmatprep.subr.msk.mxu0 %vm271_vm1, %v257_v2  ;;  %v581_v21 = vpop.permute.xlu0 %580 }
  0x98   : > { %3338 = vmatpush1.msk.msra.mxu0 %vm271_vm1, %v3800_v1  ;;  %v584_v22 = vsel %vm582_vm4, %v579_v15, %v581_v21  ;;  %492 = vmatprep.mubr.f32.mxu0 %v3692_v0 }
  0x99   : > { %3455 = vmatpush3.msk.msra.mxu1 %vm271_vm1, %v3808_v3  ;;  %3343 = vmatprep.subr.msk.mxu0 %vm271_vm1, %v584_v22  ;;  %v750_v23 = vpop.permute.xlu1 %749 }
  0x9a   : > { %3456 = vmatprep.mubr.msk.f32.mxu1 %vm3693_vm0, %v3692_v0  ;;  %3459 = vmatprep.subr.mxu1 %v3692_v0 }
  0x9b   : > { %3457 = vmatmul.mubr.msk.f32.vlgmr.msra.gmra.mrb[2].mxu1 %vm267_vm3, %v250_v24  ;;  %v748_v25 = vpop.permute.xlu0 %747 }
  0x9c   : > { %3460 = vmatpush3.msk.msra.mxu1 %vm271_vm1, %v581_v21  ;;  %3461 = vmatprep.mubr.msk.f32.mxu1 %vm3693_vm0, %v3692_v0  ;;  %v753_v28 = vsel %vm751_vm5, %v748_v25, %v750_v23 }
  0x9d   : > { %3464 = vmatprep.subr.mxu1 %v3692_v0  ;;  %v917_v27 = vpop.permute.xlu1 %916 }
  0x9f   : > { %3339 = vmatmul.mubr.msk.f32.vlgmr.msra.gmra.mrb[0].mxu0 %vm267_vm3, %v250_v24  ;;  %v746_v30 = vpop.permute.xlu0 %745  ;;  %3462 = vmatmul.mubr.msk.f32.vlgmr.msra.gmra.mrb[4].mxu1 %vm267_vm3, %v3342_v29 }
  0xa0   : > { %3344 = vmatpush1.msk.msra.mxu0 %vm271_vm1, %v583_v26  ;;  %658 = vmatprep.mubr.f32.mxu0 %v3692_v0  ;;  %v752_v35 = vsel %vm751_vm5, %v746_v30, %v748_v25  ;;  %v1766_v25 = vlaneseq }
  0xa1   : > { %3349 = vmatprep.subr.msk.mxu0 %vm271_vm1, %v753_v28  ;;  %3465 = vmatpush3.msk.msra.mxu1 %vm271_vm1, %v750_v23  ;;  %v915_v31 = vpop.permute.xlu1 %914 }
  0xa2   : > { %3466 = vmatprep.mubr.msk.f32.mxu1 %vm3693_vm0, %v3692_v0  ;;  %3469 = vmatprep.subr.mxu1 %v3692_v0  ;;  %v921_v42 = vsel %vm920_vm6, %v915_v31, %v917_v27  ;;  %v1767_v26 = vshrl.u32 %v1766_v25, 7  ;;  %v1764_v31 = vld [vmem:[%s4152_s1] sm:$0x7] }
  0xa3   : > { %v919_v33 = vpop.permute.xlu0 %918  ;;  %3467 = vmatmul.mubr.msk.f32.vlgmr.msra.gmra.mrb[6].mxu1 %vm267_vm3, %v3348_v32 }
  0xa4   : > { %3470 = vmatpush3.msk.msra.mxu1 %vm271_vm1, %v919_v33  ;;  %3471 = vmatprep.mubr.msk.f32.mxu1 %vm3693_vm0, %v3692_v0  ;;  %v922_v37 = vsel %vm920_vm6, %v917_v27, %v919_v33  ;;  %v1768_v27 = vsub.s32 0, %v1767_v26  ;;  %v1772_v28 = vsub.s32 1, %v1767_v26 }
  0xa5   : > { %v1088_v36 = vpop.permute.xlu1 %1087  ;;  %3474 = vmatprep.subr.mxu1 %v3692_v0 }
  0xa6   : > { %v1769_v33 = vrot.slane %v1764_v31, %v1768_v27 }
  0xa7   : > { %3345 = vmatmul.mubr.msk.f32.vlgmr.msra.gmra.mrb[0].mxu0 %vm267_vm3, %v3342_v29  ;;  %v1086_v38 = vpop.permute.xlu0 %1085  ;;  %3472 = vmatmul.mubr.msk.f32.vlgmr.msra.gmra.mrb[8].mxu1 %vm267_vm3, %v3354_v34 }
  0xa8   : > { %3350 = vmatpush1.msk.msra.mxu0 %vm271_vm1, %v752_v35  ;;  %827 = vmatprep.mubr.f32.mxu0 %v3692_v0  ;;  %v1091_v44 = vsel %vm1089_vm7, %v1086_v38, %v1088_v36 }
  0xa9   : > { %3355 = vmatprep.subr.msk.mxu0 %vm271_vm1, %v922_v37  ;;  %v1255_v40 = vpop.permute.xlu1 %1254  ;;  %3475 = vmatpush3.msk.msra.mxu1 %vm271_vm1, %v1088_v36  ;;  %v1773_v37 = vrot.slane %v1764_v31, %v1772_v28  ;;  %v3404_v28 = vld [vmem:[%s4155_s4 + $0x38] sm:$0xff] }
  0xaa   : > { %3476 = vmatprep.mubr.msk.f32.mxu1 %vm3693_vm0, %v3692_v0  ;;  %3479 = vmatprep.subr.mxu1 %v3692_v0 }
  0xab   : > { %v1084_v41 = vpop.permute.xlu0 %1083  ;;  %3477 = vmatmul.mubr.msk.f32.vlgmr.msra.gmra.mrb[10].mxu1 %vm267_vm3, %v3360_v39 }
  0xac   : > { %3481 = vmatprep.mubr.msk.f32.mxu1 %vm3693_vm0, %v3692_v0  ;;  %v1090_v50 = vsel %vm1089_vm7, %v1084_v41, %v1086_v38  ;;  %v1776_v38 = vsub.s32 2, %v1767_v26 }
  0xad   : > { %v1253_v43 = vpop.permute.xlu1 %1252 }
  0xae   : > { %v1259_v55 = vsel %vm1258_vm8, %v1253_v43, %v1255_v40 }
  0xaf   : > { %3351 = vmatmul.mubr.msk.f32.vlgmr.msra.gmra.mrb[0].mxu0 %vm267_vm3, %v3348_v32  ;;  %v1257_v45 = vpop.permute.xlu0 %1256 }
  0xb0   : > { %3356 = vmatpush1.msk.msra.mxu0 %vm271_vm1, %v921_v42  ;;  %996 = vmatprep.mubr.f32.mxu0 %v3692_v0  ;;  %v1260_v51 = vsel %vm1258_vm8, %v1255_v40, %v1257_v45 }
  0xb1   : > { %3361 = vmatprep.subr.msk.mxu0 %vm271_vm1, %v1091_v44  ;;  %3480 = vmatpush3.msk.msra.mxu1 %vm271_vm1, %v1257_v45  ;;  %v1426_v47 = vpop.permute.xlu1 %1425  ;;  %v1777_v44 = vrot.slane %v1764_v31, %v1776_v38 }
  0xb2   : > { %3482 = vmatmul.mubr.msk.f32.vlgmr.msra.gmra.mrb[12].mxu1 %vm267_vm3, %v3366_v46  ;;  %3484 = vmatprep.subr.mxu1 %v3692_v0 }
  0xb3   : > { %v1424_v48 = vpop.permute.xlu0 %1423  ;;  %3485 = vmatpush3.msk.msra.mxu1 %vm271_vm1, %v1426_v47  ;;  %3486 = vmatprep.mubr.msk.f32.mxu1 %vm3693_vm0, %v3692_v0 }
  0xb4   : > { %3489 = vmatprep.subr.mxu1 %v3692_v0  ;;  %v1429_v56 = vsel %vm1427_vm9, %v1424_v48, %v1426_v47 }
  0xb5   : > { %v1593_v57 = vpop.permute.xlu1 %1592 }
  0xb6   : > { %3487 = vmatmul.mubr.msk.f32.vlgmr.msra.gmra.mrb[14].mxu1 %vm267_vm3, %v3372_v49 }
  0xb7   : > { %3357 = vmatmul.mubr.msk.f32.vlgmr.msra.gmra.mrb[0].mxu0 %vm267_vm3, %v3354_v34  ;;  %v1422_v52 = vpop.permute.xlu0 %1421  ;;  %3491 = vmatprep.mubr.msk.f32.mxu1 %vm3693_vm0, %v3692_v0 }
  0xb8   : > { %3362 = vmatpush1.msk.msra.mxu0 %vm271_vm1, %v1090_v50  ;;  %1165 = vmatprep.mubr.f32.mxu0 %v3692_v0  ;;  %v1428_v58 = vsel %vm1427_vm9, %v1422_v52, %v1424_v48 }
  0xb9   : > { %3367 = vmatprep.subr.msk.mxu0 %vm271_vm1, %v1260_v51  ;;  %v1591_v60 = vpop.permute.xlu1 %1590 }
  0xba   : > { %v1597_v61 = vsel %vm1596_vm10, %v1591_v60, %v1593_v57 }
  0xbb   : > { %v1595_v54 = vpop.permute.xlu0 %1594 }
  0xbc   : > { %3490 = vmatpush3.msk.msra.mxu1 %vm271_vm1, %v1595_v54  ;;  %v1598_v59 = vsel %vm1596_vm10, %v1593_v57, %v1595_v54 }
  0xbd   : > { %3492 = vmatmul.mubr.msk.f32.vlgmr.msra.gmra.mrb[16].mxu1 %vm267_vm3, %v3378_v53  ;;  %3494 = vmatprep.subr.mxu1 %v3692_v0 }
  0xbe   : > { %3496 = vmatprep.mubr.msk.f32.mxu1 %vm3693_vm0, %v3692_v0 }
  0xbf   : > { %3363 = vmatmul.mubr.msk.f32.vlgmr.msra.gmra.mrb[0].mxu0 %vm267_vm3, %v3360_v39 }
  0xc0   : > { %3368 = vmatpush1.msk.msra.mxu0 %vm271_vm1, %v1259_v55  ;;  %1334 = vmatprep.mubr.f32.mxu0 %v3692_v0 }
  0xc1   : > { %3373 = vmatprep.subr.msk.mxu0 %vm271_vm1, %v1429_v56 }
  0xc7   : > { %3369 = vmatmul.mubr.msk.f32.vlgmr.msra.gmra.mrb[0].mxu0 %vm267_vm3, %v3366_v46 }
  0xc8   : > { %3374 = vmatpush1.msk.msra.mxu0 %vm271_vm1, %v1428_v58  ;;  %1503 = vmatprep.mubr.f32.mxu0 %v3692_v0 }
  0xc9   : > { %3379 = vmatprep.subr.msk.mxu0 %vm271_vm1, %v1598_v59  ;;  %v3384_v59 = vld [vmem:[%s4155_s4 + $0x8] sm:$0xff] }
  0xcc   : > { %v1756_v29 = vpop.permute.xlu0 %1755 }
  0xcf   : > { %3375 = vmatmul.mubr.msk.f32.vlgmr.msra.gmra.mrb[0].mxu0 %vm267_vm3, %v3372_v49 }
  0xd0   : > { %3380 = vmatpush1.msk.msra.mxu0 %vm271_vm1, %v1597_v61  ;;  %1672 = vmatprep.mubr.f32.mxu0 %v3692_v0 }
  0xd7   : > { %3381 = vmatmul.mubr.msk.f32.vlgmr.msra.gmra.mrb[0].mxu0 %vm267_vm3, %v3378_v53  ;;  %v3236_v53 = vld [vmem:[%s4156_s5] sm:$0xff] }
  0xd8   : > { %1895 = vmatprep.mubr.f32.mxu0 %v3692_v0 }
 0x168   : > { %v415_v62 = vpop.f32.mrb[0].mxu1 }
 0x169   : > { %v3453_v63 = vpop.f32.mrb[1].mxu1 }
 0x16e   : > { %v565_v1 = vpop.f32.mrb[2].mxu1 }
 0x16f   : > { %v566_v2 = vadd.f32 %v565_v1, %v415_v62  ;;  %v3458_v3 = vpop.f32.mrb[3].mxu1  ;;  %v1807_v1 = vld [vmem:[%s4155_s4] sm:$0xff] }
 0x172   : > { %v731_v4 = vpop.f32.mrb[4].mxu1 }
 0x173   : > { %v737_v5 = vadd.f32 %v731_v4, %v566_v2  ;;  %v3463_v6 = vpop.f32.mrb[5].mxu1  ;;  %v3389_v4 = vld [vmem:[%s4155_s4 + $0x10] sm:$0xff] }
 0x176   : > { %v900_v7 = vpop.f32.mrb[6].mxu1 }
 0x177   : > { %v906_v8 = vadd.f32 %v900_v7, %v737_v5  ;;  %v3468_v9 = vpop.f32.mrb[7].mxu1 }
 0x178   : > { %v3392_v9 = vld [vmem:[%s4155_s4 + $0x18] sm:$0xff] }
 0x17a   : > { %v1069_v10 = vpop.f32.mrb[8].mxu1 }
 0x17b   : > { %v1075_v11 = vadd.f32 %v1069_v10, %v906_v8  ;;  %v3473_v12 = vpop.f32.mrb[9].mxu1 }
 0x17c   : > { %v3395_v12 = vld [vmem:[%s4155_s4 + $0x20] sm:$0xff] }
 0x17e   : > { %v1238_v13 = vpop.f32.mrb[10].mxu1 }
 0x17f   : > { %v1244_v14 = vadd.f32 %v1238_v13, %v1075_v11  ;;  %v3478_v15 = vpop.f32.mrb[11].mxu1 }
 0x185   : > { %v1407_v16 = vpop.f32.mrb[12].mxu1 }
 0x186   : > { %v1413_v17 = vadd.f32 %v1407_v16, %v1244_v14  ;;  %v3483_v18 = vpop.f32.mrb[13].mxu1 }
 0x189   : > { %v1576_v19 = vpop.f32.mrb[14].mxu1 }
 0x18a   : > { %v1582_v20 = vadd.f32 %v1576_v19, %v1413_v17  ;;  %v3488_v21 = vpop.f32.mrb[15].mxu1  ;;  %v3398_v17 = vld [vmem:[%s4155_s4 + $0x28] sm:$0xff] }
 0x190   : > { %v1745_v22 = vpop.f32.mrb[16].mxu1 }
 0x191   : > { %v1751_v23 = vadd.f32 %v1745_v22, %v1582_v20  ;;  %v3493_v24 = vpop.f32.mrb[17].mxu1  ;;  %v3401_v20 = vld [vmem:[%s4155_s4 + $0x30] sm:$0xff] }
 0x193   : > { %v1760_v35 = vadd.f32 %v1756_v29, %v1751_v23 }
 0x195   : > { %v1763_v42 = vmax.f32 %v1760_v35, 0.0 }
 0x197   : > { %v1783_v45 = vmul.f32 %v1777_v44, %v1763_v42 }
 0x1aa   : > { %v1674_v30 = vpop.f32.mrb[0].mxu0 }
 0x1ab   : > { %v1758_v32 = vadd.f32 %v1756_v29, %v1674_v30  ;;  %v1676_v34 = vpop.f32.mrb[1].mxu0 }
 0x1ac   : > { %v1759_v36 = vadd.f32 %v1756_v29, %v1676_v34 }
 0x1ad   : > { %v1761_v39 = vmax.f32 %v1758_v32, 0.0  ;;  %v3407_v32 = vld [vmem:[%s4155_s4 + $0x40] sm:$0xff] }
 0x1ae   : > { %v1762_v40 = vmax.f32 %v1759_v36, 0.0 }
 0x1af   : > { %v1781_v41 = vmul.f32 %v1769_v33, %v1761_v39 }
 0x1b0   : > { %v1782_v43 = vmul.f32 %v1773_v37, %v1762_v40 }
 0x1b1   : > { %1789 = vrot.lane.b32.xlu0 %v1781_v41, %s3703_s29 }
 0x1b2   : > { %1791 = vrot.lane.b32.xlu1 %v1782_v43, %s3703_s29 }
 0x1b6   : > { %1793 = vrot.lane.b32.xlu1 %v1783_v45, %s3703_s29  ;;  %s3704_s29 = smov [#allocation3]  }
 0x223   : > { %v1790_v46 = vpop.permute.xlu0 %1789 }
 0x224   : > { %1801 = vst.msk [vmem:[#allocation2] sm:$0xff] %vm1800_vm12, %v1790_v46  ;;  %v1792_v47 = vpop.permute.xlu1 %1791 }
 0x225   : > { %v1795_v48 = vsel %vm1784_vm11, %v1790_v46, %v1792_v47 }
 0x226   : > { %1818 = vrot.lane.b32.xlu1 %v1795_v48, %s3694_s14 }
 0x228   : > { %v1794_v49 = vpop.permute.xlu1 %1793 }
 0x229   : > { %v1796_v50 = vsel %vm1784_vm11, %v1792_v47, %v1794_v49 }
 0x22a   : > { %1804 = vst.msk [vmem:[#allocation2 + $0x10] sm:$0xff] %vm1803_vm13, %v1796_v50 }
 0x22b   : > { %1806 = vst.msk [vmem:[#allocation2 + $0x10] sm:$0xff] %vm1805_vm14, %v3692_v0  ;;  %v1808_v51 = vld [vmem:[#allocation2] sm:$0xff] }
 0x22c   : > { %1816 = vrot.lane.b32.xlu1 %v1808_v51, %s3694_s14 }
 0x232   : > { %v1810_v52 = vld [vmem:[#allocation2 + $0x10] sm:$0xff] }
 0x233   : > { %1820 = vrot.lane.b32.xlu0 %v1810_v52, %s3694_s14  ;;  %2122 = vrot.lane.b32.xlu1 %v1810_v52, %s3695_s15  ;;  %s3632_s14 = sshll.u32 %s3704_s29, 4  ;;  %s3633_s14 = int_to_ptr.vmem [resolvable:$false] %s3632_s14 }
 0x237   : > { %2120 = vrot.lane.b32.xlu0 %v1795_v48, %s3695_s15  ;;  %2280 = vrot.lane.b32.xlu1 %v1795_v48, %s3696_s16 }
 0x23b   : > { %2118 = vrot.lane.b32.xlu0 %v1808_v51, %s3695_s15  ;;  %2278 = vrot.lane.b32.xlu1 %v1808_v51, %s3696_s16  ;;  %s3634_s15 = scalar_lea.vmem %s3633_s14, 768 }
 0x23f   : > { %2282 = vrot.lane.b32.xlu0 %v1810_v52, %s3696_s16  ;;  %2442 = vrot.lane.b32.xlu1 %v1810_v52, %s3697_s17 }
 0x243   : > { %2440 = vrot.lane.b32.xlu0 %v1795_v48, %s3697_s17  ;;  %2600 = vrot.lane.b32.xlu1 %v1795_v48, %s3698_s18 }
 0x247   : > { %2438 = vrot.lane.b32.xlu0 %v1808_v51, %s3697_s17  ;;  %2598 = vrot.lane.b32.xlu1 %v1808_v51, %s3698_s18 }
 0x24b   : > { %2602 = vrot.lane.b32.xlu0 %v1810_v52, %s3698_s18  ;;  %2762 = vrot.lane.b32.xlu1 %v1810_v52, %s3699_s19 }
 0x24f   : > { %2760 = vrot.lane.b32.xlu0 %v1795_v48, %s3699_s19  ;;  %2920 = vrot.lane.b32.xlu1 %v1795_v48, %s3700_s20 }
 0x253   : > { %2758 = vrot.lane.b32.xlu0 %v1808_v51, %s3699_s19  ;;  %2918 = vrot.lane.b32.xlu1 %v1808_v51, %s3700_s20  ;;  %s242_s19 = sand.u32 1, %s3682_s22  }
 0x254   : > { %s3253_s28 = scalar_lea.sflag [#allocation4], %s242_s19 }
 0x257   : > { %2922 = vrot.lane.b32.xlu0 %v1810_v52, %s3700_s20  ;;  %3082 = vrot.lane.b32.xlu1 %v1810_v52, %s3701_s26  ;;  %s3571_s20 = smul.u32 24, %s242_s19 }
 0x25b   : > { %3080 = vrot.lane.b32.xlu0 %v1795_v48, %s3701_s26  ;;  %3239 = vperm.xlu1 %3626, %v3236_v53  }
 0x25f   : > { %3078 = vrot.lane.b32.xlu0 %v1808_v51, %s3701_s26  ;;  %s244_s26 = scalar_lea.vmem [#allocation3], %s3571_s20 }
 0x260   : > { %s3267_s10 = sshll.u32 %s244_s26, 4  ;;  %s4111_s10 = int_to_ptr.vmem [resolvable:$true] %s3267_s10 }
 0x261   : > { %s3628_s25 = scalar_lea.vmem %s4111_s10, 384  ;;  %p3635_p0 = scmp.lt.s32.totalorder %s4111_s10, %s3633_s14 }
 0x262   : > { %p3629_p11 = scmp.ne.s32.totalorder %s4111_s10, %s3628_s25  ;;  %p3636_p1 = scmp.lt.s32.totalorder %s3634_s15, %s3628_s25 }
 0x264   : > { %p3630_p12 = pnand %p3629_p11, %p3778_p5  ;;  %p3637_p2 = por %p3636_p1, %p3635_p0 }
 0x266   : > { %p3631_p13 = pneg %p3630_p12 }
 0x268   : > { %p3638_p3 = pnand %p3637_p2, %p3631_p13 }
 0x298   : > { %v1819_v54 = vpop.permute.xlu1 %1818 }
 0x29e   : > { %v1817_v55 = vpop.permute.xlu1 %1816 }
 0x29f   : > { %v1822_v60 = vsel %vm264_vm2, %v1817_v55, %v1819_v54 }
 0x2a5   : > { %v1821_v56 = vpop.permute.xlu0 %1820  ;;  %v2123_v57 = vpop.permute.xlu1 %2122 }
 0x2a6   : > { %3495 = vmatpush3.msra.mxu1 %v1821_v56  ;;  %v1823_v58 = vsel %vm264_vm2, %v1819_v54, %v1821_v56 }
 0x2a7   : > { %1831 = vmatprep.subr.mxu0 %v1823_v58  ;;  %3497 = vmatmul.mubr.msk.f32.vlgmr.msra.gmra.mrb[18].mxu1 %vm1827_vm15, %v3384_v59 }
 0x2a8   : > { %1832 = vmatpush1.msra.mxu0 %v1822_v60  ;;  %3499 = vmatprep.subr.mxu1 %v3692_v0 }
 0x2a9   : > { %3385 = vmatmul.mubr.msk.f32.vlgmr.msra.gmra.mrb[2].mxu0 %vm1827_vm15, %v3384_v59  ;;  %1975 = vmatprep.subr.mxu0 %v1795_v48  ;;  %v2121_v61 = vpop.permute.xlu0 %2120  ;;  %v2281_v62 = vpop.permute.xlu1 %2280 }
 0x2aa   : > { %1976 = vmatpush1.msra.mxu0 %v1808_v51  ;;  %v2125_v63 = vsel %vm582_vm4, %v2121_v61, %v2123_v57  ;;  %2039 = vmatprep.mubr.f32.mxu0 %v3692_v0 }
 0x2ab   : > { %2132 = vmatprep.subr.mxu0 %v2125_v63  ;;  %3500 = vmatpush3.msra.mxu1 %v1810_v52 }
 0x2ac   : > { %3501 = vmatprep.mubr.msk.f32.mxu1 %vm3693_vm0, %v3692_v0  ;;  %3504 = vmatprep.subr.mxu1 %v3692_v0 }
 0x2ad   : > { %v2119_v2 = vpop.permute.xlu0 %2118  ;;  %v2279_v3 = vpop.permute.xlu1 %2278  ;;  %3502 = vmatmul.mubr.msk.f32.vlgmr.msra.gmra.mrb[20].mxu1 %vm1827_vm15, %v1807_v1 }
 0x2ae   : > { %3505 = vmatpush3.msra.mxu1 %v2123_v57  ;;  %3506 = vmatprep.mubr.msk.f32.mxu1 %vm3693_vm0, %v3692_v0  ;;  %v2124_v5 = vsel %vm582_vm4, %v2119_v2, %v2121_v61  ;;  %v2284_v13 = vsel %vm751_vm5, %v2279_v3, %v2281_v62 }
 0x2af   : > { %3509 = vmatprep.subr.mxu1 %v3692_v0 }
 0x2b1   : > { %3387 = vmatmul.mubr.msk.f32.vlgmr.msra.gmra.mrb[2].mxu0 %vm1827_vm15, %v1807_v1  ;;  %v2283_v6 = vpop.permute.xlu0 %2282  ;;  %v2443_v7 = vpop.permute.xlu1 %2442  ;;  %3507 = vmatmul.mubr.msk.f32.vlgmr.msra.gmra.mrb[22].mxu1 %vm1827_vm15, %v3389_v4 }
 0x2b2   : > { %2133 = vmatpush1.msra.mxu0 %v2124_v5  ;;  %v2285_v8 = vsel %vm751_vm5, %v2281_v62, %v2283_v6  ;;  %2196 = vmatprep.mubr.f32.mxu0 %v3692_v0 }
 0x2b3   : > { %2292 = vmatprep.subr.mxu0 %v2285_v8  ;;  %3510 = vmatpush3.msra.mxu1 %v2283_v6 }
 0x2b4   : > { %3511 = vmatprep.mubr.msk.f32.mxu1 %vm3693_vm0, %v3692_v0  ;;  %3514 = vmatprep.subr.mxu1 %v3692_v0 }
 0x2b5   : > { %v2441_v10 = vpop.permute.xlu0 %2440  ;;  %v2601_v11 = vpop.permute.xlu1 %2600  ;;  %3512 = vmatmul.mubr.msk.f32.vlgmr.msra.gmra.mrb[24].mxu1 %vm1827_vm15, %v3392_v9 }
 0x2b6   : > { %3515 = vmatpush3.msra.mxu1 %v2443_v7  ;;  %3516 = vmatprep.mubr.msk.f32.mxu1 %vm3693_vm0, %v3692_v0  ;;  %v2445_v16 = vsel %vm920_vm6, %v2441_v10, %v2443_v7 }
 0x2b7   : > { %3519 = vmatprep.subr.mxu1 %v3692_v0 }
 0x2b9   : > { %3390 = vmatmul.mubr.msk.f32.vlgmr.msra.gmra.mrb[2].mxu0 %vm1827_vm15, %v3389_v4  ;;  %v2439_v14 = vpop.permute.xlu0 %2438  ;;  %v2599_v15 = vpop.permute.xlu1 %2598  ;;  %3517 = vmatmul.mubr.msk.f32.vlgmr.msra.gmra.mrb[26].mxu1 %vm1827_vm15, %v3395_v12 }
 0x2ba   : > { %2293 = vmatpush1.msra.mxu0 %v2284_v13  ;;  %2356 = vmatprep.mubr.f32.mxu0 %v3692_v0  ;;  %v2444_v21 = vsel %vm920_vm6, %v2439_v14, %v2441_v10  ;;  %v2604_v27 = vsel %vm1089_vm7, %v2599_v15, %v2601_v11 }
 0x2bb   : > { %2452 = vmatprep.subr.mxu0 %v2445_v16  ;;  %3521 = vmatprep.mubr.msk.f32.mxu1 %vm3693_vm0, %v3692_v0 }
 0x2bd   : > { %v2603_v18 = vpop.permute.xlu0 %2602  ;;  %v2763_v19 = vpop.permute.xlu1 %2762 }
 0x2be   : > { %3520 = vmatpush3.msra.mxu1 %v2603_v18  ;;  %v2605_v23 = vsel %vm1089_vm7, %v2601_v11, %v2603_v18 }
 0x2bf   : > { %3522 = vmatmul.mubr.msk.f32.vlgmr.msra.gmra.mrb[28].mxu1 %vm1827_vm15, %v3398_v17  ;;  %3524 = vmatprep.subr.mxu1 %v3692_v0 }
 0x2c0   : > { %3525 = vmatpush3.msra.mxu1 %v2763_v19  ;;  %3526 = vmatprep.mubr.msk.f32.mxu1 %vm3693_vm0, %v3692_v0 }
 0x2c1   : > { %3393 = vmatmul.mubr.msk.f32.vlgmr.msra.gmra.mrb[2].mxu0 %vm1827_vm15, %v3392_v9  ;;  %v2761_v22 = vpop.permute.xlu0 %2760  ;;  %3529 = vmatprep.subr.mxu1 %v3692_v0  ;;  %v2921_v24 = vpop.permute.xlu1 %2920 }
 0x2c2   : > { %2453 = vmatpush1.msra.mxu0 %v2444_v21  ;;  %2516 = vmatprep.mubr.f32.mxu0 %v3692_v0  ;;  %v2765_v30 = vsel %vm1258_vm8, %v2761_v22, %v2763_v19 }
 0x2c3   : > { %2612 = vmatprep.subr.mxu0 %v2605_v23  ;;  %3527 = vmatmul.mubr.msk.f32.vlgmr.msra.gmra.mrb[30].mxu1 %vm1827_vm15, %v3401_v20 }
 0x2c4   : > { %3531 = vmatprep.mubr.msk.f32.mxu1 %vm3693_vm0, %v3692_v0 }
 0x2c5   : > { %v2759_v25 = vpop.permute.xlu0 %2758  ;;  %v2919_v26 = vpop.permute.xlu1 %2918 }
 0x2c6   : > { %v2764_v33 = vsel %vm1258_vm8, %v2759_v25, %v2761_v22  ;;  %v2924_v36 = vsel %vm1427_vm9, %v2919_v26, %v2921_v24 }
 0x2c9   : > { %3396 = vmatmul.mubr.msk.f32.vlgmr.msra.gmra.mrb[2].mxu0 %vm1827_vm15, %v3395_v12  ;;  %v2923_v29 = vpop.permute.xlu0 %2922  ;;  %v3083_v31 = vpop.permute.xlu1 %3082 }
 0x2ca   : > { %2613 = vmatpush1.msra.mxu0 %v2604_v27  ;;  %2676 = vmatprep.mubr.f32.mxu0 %v3692_v0  ;;  %v2925_v34 = vsel %vm1427_vm9, %v2921_v24, %v2923_v29 }
 0x2cb   : > { %2772 = vmatprep.subr.mxu0 %v2765_v30  ;;  %3530 = vmatpush3.msra.mxu1 %v2923_v29 }
 0x2cc   : > { %3532 = vmatmul.mubr.msk.f32.vlgmr.msra.gmra.mrb[32].mxu1 %vm1827_vm15, %v3404_v28  ;;  %3534 = vmatprep.subr.mxu1 %v3692_v0 }
 0x2cd   : > { %3535 = vmatpush3.msra.mxu1 %v3083_v31  ;;  %3536 = vmatprep.mubr.msk.f32.mxu1 %vm3693_vm0, %v3692_v0  ;;  %v3081_v35 = vpop.permute.xlu0 %3080  ;;  %vm3250_vm0 = vcmask 261120  }
 0x2ce   : > { %v3085_v37 = vsel %vm1596_vm10, %v3081_v35, %v3083_v31 }
 0x2d0   : > { %3537 = vmatmul.mubr.msk.f32.vlgmr.msra.gmra.mrb[34].mxu1 %vm1827_vm15, %v3407_v32 }
 0x2d1   : > { %3399 = vmatmul.mubr.msk.f32.vlgmr.msra.gmra.mrb[2].mxu0 %vm1827_vm15, %v3398_v17  ;;  %v3079_v38 = vpop.permute.xlu0 %3078 }
 0x2d2   : > { %2773 = vmatpush1.msra.mxu0 %v2764_v33  ;;  %2836 = vmatprep.mubr.f32.mxu0 %v3692_v0  ;;  %v3084_v39 = vsel %vm1596_vm10, %v3079_v38, %v3081_v35 }
 0x2d3   : > { %2932 = vmatprep.subr.mxu0 %v2925_v34 }
 0x2d9   : > { %3402 = vmatmul.mubr.msk.f32.vlgmr.msra.gmra.mrb[2].mxu0 %vm1827_vm15, %v3401_v20 }
 0x2da   : > { %2933 = vmatpush1.msra.mxu0 %v2924_v36  ;;  %2996 = vmatprep.mubr.f32.mxu0 %v3692_v0  ;;  %v3240_v63 = vpop.permute.xlu1 %3239 }
 0x2db   : > { %3092 = vmatprep.subr.mxu0 %v3085_v37 }
 0x2e1   : > { %3405 = vmatmul.mubr.msk.f32.vlgmr.msra.gmra.mrb[2].mxu0 %vm1827_vm15, %v3404_v28 }
 0x2e2   : > { %3093 = vmatpush1.msra.mxu0 %v3084_v39  ;;  %3156 = vmatprep.mubr.f32.mxu0 %v3692_v0 }
 0x2e9   : > { %3408 = vmatmul.mubr.msk.f32.vlgmr.msra.gmra.mrb[2].mxu0 %vm1827_vm15, %v3407_v32 }
 0x37a   : > { %v1968_v40 = vpop.f32.mrb[18].mxu1 }
 0x37b   : > { %v3498_v41 = vpop.f32.mrb[19].mxu1 }
 0x380   : > { %v2112_v42 = vpop.f32.mrb[20].mxu1 }
 0x381   : > { %v2113_v43 = vadd.f32 %v2112_v42, %v1968_v40  ;;  %v3503_v44 = vpop.f32.mrb[21].mxu1 }
 0x384   : > { %v2269_v45 = vpop.f32.mrb[22].mxu1 }
 0x385   : > { %v2275_v46 = vadd.f32 %v2269_v45, %v2113_v43  ;;  %v3508_v47 = vpop.f32.mrb[23].mxu1 }
 0x388   : > { %v2429_v48 = vpop.f32.mrb[24].mxu1 }
 0x389   : > { %v2435_v49 = vadd.f32 %v2429_v48, %v2275_v46  ;;  %v3513_v50 = vpop.f32.mrb[25].mxu1 }
 0x38c   : > { %v2589_v51 = vpop.f32.mrb[26].mxu1 }
 0x38d   : > { %v2595_v52 = vadd.f32 %v2589_v51, %v2435_v49  ;;  %v3518_v53 = vpop.f32.mrb[27].mxu1 }
 0x392   : > { %v2749_v54 = vpop.f32.mrb[28].mxu1 }
 0x393   : > { %v2755_v55 = vadd.f32 %v2749_v54, %v2595_v52  ;;  %v3523_v0 = vpop.f32.mrb[29].mxu1 }
 0x396   : > { %v2909_v56 = vpop.f32.mrb[30].mxu1 }
 0x397   : > { %v2915_v57 = vadd.f32 %v2909_v56, %v2755_v55  ;;  %v3528_v58 = vpop.f32.mrb[31].mxu1 }
 0x39f   : > { %v3069_v59 = vpop.f32.mrb[32].mxu1 }
 0x3a0   : > { %v3075_v60 = vadd.f32 %v3069_v59, %v2915_v57  ;;  %v3533_v61 = vpop.f32.mrb[33].mxu1 }
 0x3a3   : > { %v3229_v62 = vpop.f32.mrb[34].mxu1 }
 0x3a4   : > { %v3235_v1 = vadd.f32 %v3229_v62, %v3075_v60  ;;  %v3538_v2 = vpop.f32.mrb[35].mxu1 }
 0x3a6   : > { %v3244_v3 = vadd.f32 %v3240_v63, %v3235_v1 }
 0x3a8   : > { %v3247_v4 = vmax.f32 %v3244_v3, 0.0 }
 0x3aa   : > { %3251 = vst.msk [vmem:[%s244_s26 + $0x10] sm:$0xff] %vm3250_vm0, %v3247_v4 }
 0x3bc   : > { %v3158_v5 = vpop.f32.mrb[2].mxu0 }
 0x3bd   : > { %v3242_v6 = vadd.f32 %v3240_v63, %v3158_v5  ;;  %v3160_v7 = vpop.f32.mrb[3].mxu0 }
 0x3be   : > { %v3243_v8 = vadd.f32 %v3240_v63, %v3160_v7 }
 0x3bf   : > { %v3245_v9 = vmax.f32 %v3242_v6, 0.0 }
 0x3c0   : > { %v3246_v10 = vmax.f32 %v3243_v8, 0.0 }
 0x3c1   : > { %3248 = vst [vmem:[%s244_s26] sm:$0xff] %v3245_v9 }
 0x3c2   : > { %3249 = vst [vmem:[%s244_s26 + $0x8] sm:$0xff] %v3246_v10 }
 0x3c3   : > { %3641 = shalt.err (!%p3638_p3)
}
 0x3c4   : > { %s3642_s16 = scalar_lea.hbm %s4109_s13, 384  ;;  %s3646_s19 = scalar_lea.hbm %s4157_s6, 768 }
 0x3c5   : > { %p3643_p4 = scmp.ne.s32.totalorder %s4109_s13, %s3642_s16  ;;  %p3647_p9 = scmp.lt.u32.totalorder %s4109_s13, %s4157_s6 }
 0x3c6   : > { %p3648_p10 = scmp.lt.u32.totalorder %s3646_s19, %s3642_s16  ;;  %p3650_p12 = scmp.lt.u32.totalorder %s3642_s16, %s4109_s13 }
 0x3c7   : > { %p3644_p7 = pnand %p3643_p4, %p3778_p5 }
 0x3c8   : > { %p3649_p11 = por %p3648_p10, %p3647_p9 }
 0x3c9   : > { %p3645_p8 = pneg %p3644_p7 }
 0x3ca   : > { %p3651_p13 = por %p3650_p12, %p3649_p11 }
 0x3cc   : > { %p3652_p0 = pnand %p3651_p13, %p3645_p8 }
 0x3ce   : > { %3655 = shalt.err (!%p3652_p0)
}
 0x3cf   : > { %3574 = dma.vmem_to_hbm [thread:$0]  (%p3778_p5), %s4111_s10, 384, %s4109_s13, %s3253_s28  }
 0x3d0 PF: > { %p3580_p1 = scmp.ge.s32.totalorder %s3690_s24, 2  ;;  %s3279_s9 = sand.u32 1, %s3678_s21  }
 0x3d1   : > { %s3280_s11 = scalar_lea.sflag [#allocation4], %s3279_s9 }
 0x3d2   : > { %p3577_p2 = pnand %p3580_p1, %p3782_p6 }
 0x3d4   : > { %3673 = dma.done.wait (!%p3577_p2), %s3280_s11, 384  }
 0x3d5   : > { %3675 = vsyncadd (!%p3577_p2), %s3280_s11, 4294966912  ;;  %p16_p3 = scmp.ge.s32.totalorder %s3765_s27, 4   ;;  %s4160_s21 = smov %s3682_s22 }
 0x3d6   : > { %s4161_s22 = smov %s3686_s23  ;;  %s4162_s23 = smov %s3776_s30 }
 0x3d7   : > { %s4163_s24 = smov %s3765_s27  ;;  %18 = sbr.rel (!%p16_p3) target bundleno = 3 (0x3), region = 95 }
 0x3de   :  { %3285 = vsyncpa [#allocation4], 1 }
 0x3df   :  { %3287 = vsyncpa [#allocation4 + $0x1], 1 }

</bundles_post_ra>
